<compile_context>
chip_gen: v5e
topology: v5e:2x2
jax: 0.10.0
libtpu: 0.0.40
codegen_flags: <defaults>
</compile_context>

<pallas_src>
import functools

import numpy as np
import jax
import jax.numpy as jnp
from jax.experimental import pallas as pl
from jax.experimental.pallas import tpu as pltpu

SAMPLE_RATE = 16000
N_FFT = 400
N_MELS = 64
HOP = N_FFT // 2            # 200
N_FREQ = N_FFT // 2 + 1     # 201
FREQ_PAD = 256              # padded frequency lanes (multiple of 128)
MEL_PAD = 128               # padded mel lanes (multiple of 128)
MAX_TILE_F = 1024           # frames per grid step (review: 1024-2048 sweet spot)
ROW_PAD = 8                 # extra rows per DMA window so lengths stay multiples of 8


def _round_up(x, m):
    return ((x + m - 1) // m) * m


# ----------------------------- host-side constants (built once) -----------------------------

def _hann_window(n):
    # torch.hann_window(n, periodic=True)
    k = np.arange(n, dtype=np.float64)
    return 0.5 - 0.5 * np.cos(2.0 * np.pi * k / n)


def _windowed_basis():
    """(n_fft, 2*FREQ_PAD): [hann*cos | hann*sin], zero-padded along frequency."""
    win = _hann_window(N_FFT)[:, None]                      # (400, 1)
    n = np.arange(N_FFT, dtype=np.float64)[:, None]         # (400, 1)
    k = np.arange(N_FREQ, dtype=np.float64)[None, :]        # (1, 201)
    ang = 2.0 * np.pi * n * k / N_FFT
    basis = np.zeros((N_FFT, 2 * FREQ_PAD), dtype=np.float32)
    basis[:, :N_FREQ] = (win * np.cos(ang)).astype(np.float32)
    basis[:, FREQ_PAD:FREQ_PAD + N_FREQ] = (win * np.sin(ang)).astype(np.float32)
    return basis


def _mel_filterbank():
    # torchaudio melscale_fbanks, mel_scale='htk', norm=None, f_min=0, f_max=sr/2
    def hz_to_mel(f):
        return 2595.0 * np.log10(1.0 + f / 700.0)

    def mel_to_hz(m):
        return 700.0 * (10.0 ** (m / 2595.0) - 1.0)

    f_min, f_max = 0.0, SAMPLE_RATE / 2.0
    all_freqs = np.linspace(0.0, SAMPLE_RATE / 2.0, N_FREQ)
    m_pts = np.linspace(hz_to_mel(f_min), hz_to_mel(f_max), N_MELS + 2)
    f_pts = mel_to_hz(m_pts)
    f_diff = f_pts[1:] - f_pts[:-1]                          # (n_mels+1,)
    slopes = f_pts[None, :] - all_freqs[:, None]             # (n_freq, n_mels+2)
    down = -slopes[:, :-2] / f_diff[:-1]
    up = slopes[:, 2:] / f_diff[1:]
    fb = np.maximum(0.0, np.minimum(down, up)).astype(np.float32)   # (n_freq, n_mels)
    fb_pad = np.zeros((FREQ_PAD, MEL_PAD), dtype=np.float32)
    fb_pad[:N_FREQ, :N_MELS] = fb
    return fb_pad


_BASIS_NP = _windowed_basis()            # (400, 512)
_BASIS_TOP_NP = _BASIS_NP[:HOP]          # (200, 512) — multiplies rows[f]
_BASIS_BOT_NP = _BASIS_NP[HOP:]          # (200, 512) — multiplies rows[f+1]
_FB_NP = _mel_filterbank()               # (256, 128)


# ----------------------------- Pallas kernel -----------------------------

def _mel_kernel(rows_hbm, basis_top_ref, basis_bot_ref, fb_ref, out_ref,
                rows_buf, sem, *, tile_f):
    # rows_hbm : (n_rows, HOP) raw HBM ref (memory_space=pl.ANY), hop-sized rows
    # basis_*  : (HOP, 2*FREQ_PAD) VMEM-resident windowed DFT basis halves
    # fb       : (FREQ_PAD, MEL_PAD) VMEM-resident HTK mel filterbank (zero-padded)
    # out      : (tile_f, MEL_PAD) lane-dense output tile
    # rows_buf : (tile_f + ROW_PAD, HOP) VMEM scratch, sem: DMA semaphore
    i = pl.program_id(0)
    start = pl.multiple_of(i * tile_f, 8)

    # One DMA per tile: the (tile_f + 1) rows needed for tile_f frames (+7 slack rows
    # so the transfer length stays a multiple of 8).  Each row is read from HBM once.
    cp = pltpu.make_async_copy(
        rows_hbm.at[pl.ds(start, tile_f + ROW_PAD), :], rows_buf, sem)
    cp.start()
    cp.wait()

    top = rows_buf[0:tile_f, :]          # rows[f]     for frames in this tile
    bot = rows_buf[1:tile_f + 1, :]      # rows[f + 1] for frames in this tile

    # frame[f] = [rows[f] | rows[f+1]]  =>  frame @ basis == top @ basis_top + bot @ basis_bot
    spec = (jnp.dot(top, basis_top_ref[...], preferred_element_type=jnp.float32)
            + jnp.dot(bot, basis_bot_ref[...], preferred_element_type=jnp.float32))
    re = spec[:, :FREQ_PAD]
    im = spec[:, FREQ_PAD:]
    power = re * re + im * im                                  # |X|^2, full-vreg VPU pass
    out_ref[...] = jnp.dot(power, fb_ref[...], preferred_element_type=jnp.float32)


@jax.jit
def _mel_transform_impl(wav):
    t = wav.shape[0]
    # center=True reflect padding by n_fft // 2 on both sides
    padded = jnp.pad(wav, (N_FFT // 2, N_FFT // 2), mode="reflect")
    n_frames = 1 + t // HOP

    # Big tiles amortize the ~0.35 us/step overhead, but keep >= ~4 grid steps so
    # v7x's two TensorCores both get work via dimension_semantics=("parallel",).
    tile_f = min(MAX_TILE_F, _round_up(pl.cdiv(n_frames, 4), 8))
    n_frames_pad = _round_up(n_frames, tile_f)
    n_rows = n_frames_pad + ROW_PAD

    # Hop-sized rows: row r = padded[r*HOP : (r+1)*HOP]; frame f = [rows[f] | rows[f+1]].
    total = n_rows * HOP
    padded = jnp.pad(padded, (0, total - padded.shape[0]))
    rows = padded.reshape(n_rows, HOP)

    basis_top = jnp.asarray(_BASIS_TOP_NP)
    basis_bot = jnp.asarray(_BASIS_BOT_NP)
    fb = jnp.asarray(_FB_NP)

    grid = (n_frames_pad // tile_f,)
    out = pl.pallas_call(
        functools.partial(_mel_kernel, tile_f=tile_f),
        out_shape=jax.ShapeDtypeStruct((n_frames_pad, MEL_PAD), jnp.float32),
        grid=grid,
        in_specs=[
            pl.BlockSpec(memory_space=pl.ANY),                          # rows: raw HBM
            pl.BlockSpec((HOP, 2 * FREQ_PAD), lambda i: (0, 0)),        # resident basis top
            pl.BlockSpec((HOP, 2 * FREQ_PAD), lambda i: (0, 0)),        # resident basis bot
            pl.BlockSpec((FREQ_PAD, MEL_PAD), lambda i: (0, 0)),        # resident mel fb
        ],
        out_specs=pl.BlockSpec((tile_f, MEL_PAD), lambda i: (i, 0)),
        scratch_shapes=[
            pltpu.VMEM((tile_f + ROW_PAD, HOP), jnp.float32),
            pltpu.SemaphoreType.DMA,
        ],
        compiler_params=pltpu.CompilerParams(
            dimension_semantics=("parallel",),
            vmem_limit_bytes=32 * 1024 * 1024,
        ),
    )(rows, basis_top, basis_bot, fb)

    return out[:n_frames, :N_MELS]       # (time, n_mels)


def mel_transform(waveform):
    """waveform: (1, T) or (T,) float32. Returns (time, n_mels) float32."""
    wav = jnp.asarray(waveform, jnp.float32).reshape(-1)
    return _mel_transform_impl(wav)


# ----------------------------- pure-JAX reference -----------------------------

def mel_transform_ref(waveform):
    wav = jnp.asarray(waveform, jnp.float32).reshape(-1)
    t = wav.shape[0]
    padded = jnp.pad(wav, (N_FFT // 2, N_FFT // 2), mode="reflect")
    n_frames = 1 + t // HOP
    idx = jnp.arange(n_frames)[:, None] * HOP + jnp.arange(N_FFT)[None, :]
    win = jnp.asarray(_hann_window(N_FFT).astype(np.float32))
    frames = padded[idx] * win[None, :]
    spec = jnp.fft.rfft(frames, n=N_FFT, axis=-1)            # (time, n_freq)
    power = jnp.abs(spec) ** 2
    fb = jnp.asarray(_FB_NP[:N_FREQ, :N_MELS])
    return power @ fb                                        # (time, n_mels)


# TODO(synk): InverseMelScale and GriffinLim are constructed in __init__ but unused
#             in forward(), so they are intentionally not implemented.

if __name__ == "__main__":
    key = jax.random.PRNGKey(0)
    # small synthetic waveform, shape (1, T) like a mono torchaudio load
    waveform = jax.random.normal(key, (1, 1600), dtype=jnp.float32)

    out = mel_transform(waveform)
    jax.block_until_ready(out)

    ref = mel_transform_ref(waveform)
    assert out.shape == (1 + 1600 // HOP, N_MELS), out.shape
    np.testing.assert_allclose(np.asarray(out), np.asarray(ref), rtol=2e-3, atol=2e-3)

    print("KERNEL_OK")
</pallas_src>

<mosaic_0001>
module attributes {stable_mosaic.version = 11 : i64} {
  func.func @_mel_kernel(%arg0: i32, %arg1: memref<24x200xf32, #tpu.memory_space<any>>, %arg2: memref<200x512xf32, #tpu.memory_space<vmem>>, %arg3: memref<200x512xf32, #tpu.memory_space<vmem>>, %arg4: memref<256x128xf32, #tpu.memory_space<vmem>>, %arg5: memref<8x128xf32, #tpu.memory_space<vmem>>, %arg6: memref<16x200xf32, #tpu.memory_space<vmem>>, %arg7: memref<!tpu.dma_semaphore, #tpu.memory_space<semaphore_mem>>) attributes {dimension_semantics = [#tpu.dimension_semantics<parallel>], iteration_bounds = array<i64: 2>, scalar_prefetch = 0 : i64, scratch_operands = 2 : i64, tpu.core_type = #tpu.core_type<tc>, window_params = [{}, {pipeline_mode = #tpu.pipeline_mode<synchronous>, transform_indices = @transform_1, window_bounds = array<i64: 200, 512>}, {pipeline_mode = #tpu.pipeline_mode<synchronous>, transform_indices = @transform_2, window_bounds = array<i64: 200, 512>}, {pipeline_mode = #tpu.pipeline_mode<synchronous>, transform_indices = @transform_3, window_bounds = array<i64: 256, 128>}, {transform_indices = @transform_4, window_bounds = array<i64: 8, 128>}]} {
    %c8_i32 = arith.constant 8 : i32
    %0 = arith.muli %arg0, %c8_i32 : i32
    %1 = tpu.assume_multiple %0, 8 : i32
    %c0_i32 = arith.constant 0 : i32
    %2 = tpu.memref_slice %arg1[%1, %c0_i32] : memref<24x200xf32, #tpu.memory_space<any>> -> memref<16x200xf32, #tpu.memory_space<any>>
    tpu.enqueue_dma source(%2 : memref<16x200xf32, #tpu.memory_space<any>>) target(%arg6 : memref<16x200xf32, #tpu.memory_space<vmem>>) target_semaphore(%arg7 : memref<!tpu.dma_semaphore, #tpu.memory_space<semaphore_mem>>)
    %c0_i32_0 = arith.constant 0 : i32
    %3 = tpu.memref_slice %arg1[%1, %c0_i32_0] : memref<24x200xf32, #tpu.memory_space<any>> -> memref<16x200xf32, #tpu.memory_space<any>>
    tpu.wait_dma2 semaphore(%arg7 : memref<!tpu.dma_semaphore, #tpu.memory_space<semaphore_mem>>) src(%3 : memref<16x200xf32, #tpu.memory_space<any>>) dst(%arg6 : memref<16x200xf32, #tpu.memory_space<vmem>>)
    %c0 = arith.constant 0 : index
    %c0_1 = arith.constant 0 : index
    %4 = vector.load %arg6[%c0, %c0_1] : memref<16x200xf32, #tpu.memory_space<vmem>>, vector<8x200xf32>
    %c1 = arith.constant 1 : index
    %c0_2 = arith.constant 0 : index
    %5 = vector.load %arg6[%c1, %c0_2] : memref<16x200xf32, #tpu.memory_space<vmem>>, vector<8x200xf32>
    %c0_3 = arith.constant 0 : index
    %c0_4 = arith.constant 0 : index
    %6 = vector.load %arg2[%c0_3, %c0_4] : memref<200x512xf32, #tpu.memory_space<vmem>>, vector<200x512xf32>
    %cst = arith.constant dense<0.000000e+00> : vector<8x512xf32>
    %7 = tpu.matmul %4, %6, %cst {dimension_numbers = #tpu.dot_dimension_numbers<[1], [0], [0], [1], [0, 0, 1, 1], [], []>} : vector<8x200xf32>, vector<200x512xf32>, vector<8x512xf32> -> vector<8x512xf32>
    %c0_5 = arith.constant 0 : index
    %c0_6 = arith.constant 0 : index
    %8 = vector.load %arg3[%c0_5, %c0_6] : memref<200x512xf32, #tpu.memory_space<vmem>>, vector<200x512xf32>
    %cst_7 = arith.constant dense<0.000000e+00> : vector<8x512xf32>
    %9 = tpu.matmul %5, %8, %cst_7 {dimension_numbers = #tpu.dot_dimension_numbers<[1], [0], [0], [1], [0, 0, 1, 1], [], []>} : vector<8x200xf32>, vector<200x512xf32>, vector<8x512xf32> -> vector<8x512xf32>
    %10 = arith.addf %7, %9 : vector<8x512xf32>
    %11 = vector.extract_strided_slice %10 {offsets = [0, 0], sizes = [8, 256], strides = [1, 1]} : vector<8x512xf32> to vector<8x256xf32>
    %12 = vector.extract_strided_slice %10 {offsets = [0, 256], sizes = [8, 256], strides = [1, 1]} : vector<8x512xf32> to vector<8x256xf32>
    %13 = arith.mulf %11, %11 : vector<8x256xf32>
    %14 = arith.mulf %12, %12 : vector<8x256xf32>
    %15 = arith.addf %13, %14 : vector<8x256xf32>
    %c0_8 = arith.constant 0 : index
    %c0_9 = arith.constant 0 : index
    %16 = vector.load %arg4[%c0_8, %c0_9] : memref<256x128xf32, #tpu.memory_space<vmem>>, vector<256x128xf32>
    %cst_10 = arith.constant dense<0.000000e+00> : vector<8x128xf32>
    %17 = tpu.matmul %15, %16, %cst_10 {dimension_numbers = #tpu.dot_dimension_numbers<[1], [0], [0], [1], [0, 0, 1, 1], [], []>} : vector<8x256xf32>, vector<256x128xf32>, vector<8x128xf32> -> vector<8x128xf32>
    %c0_11 = arith.constant 0 : index
    %c0_12 = arith.constant 0 : index
    %18 = vector.load %arg5[%c0_11, %c0_12] : memref<8x128xf32, #tpu.memory_space<vmem>>, vector<8x128xf32>
    tpu.vector_store %arg5[%c0_11, %c0_12], %17 {strides = array<i32>} : memref<8x128xf32, #tpu.memory_space<vmem>>, vector<8x128xf32>,
    return
  }
  func.func @transform_1(%arg0: i32) -> (i32, i32) {
    %c0_i32 = arith.constant 0 : i32
    %c0_i32_0 = arith.constant 0 : i32
    %c0_i32_1 = arith.constant 0 : i32
    return %c0_i32, %c0_i32_0 : i32, i32
  }
  func.func @transform_2(%arg0: i32) -> (i32, i32) {
    %c0_i32 = arith.constant 0 : i32
    %c0_i32_0 = arith.constant 0 : i32
    %c0_i32_1 = arith.constant 0 : i32
    return %c0_i32, %c0_i32_0 : i32, i32
  }
  func.func @transform_3(%arg0: i32) -> (i32, i32) {
    %c0_i32 = arith.constant 0 : i32
    %c0_i32_0 = arith.constant 0 : i32
    %c0_i32_1 = arith.constant 0 : i32
    return %c0_i32, %c0_i32_0 : i32, i32
  }
  func.func @transform_4(%arg0: i32) -> (i32, i32) {
    %c0_i32 = arith.constant 0 : i32
    %c0_i32_0 = arith.constant 0 : i32
    return %arg0, %c0_i32 : i32, i32
  }
}

</mosaic_0001>

<bundles_post_ra>
// kernel: reverse.1
= control target key start
LH: loop header
LB: loop body
LE: loop exit
PB: predicated region body
PF: predicated region fallthrough
CT: control target
= control target key end

     0   :  { %v2_v0 = vlaneseq  ;;  %s127_s0 = inlined_call_operand.vmem [shape: f32[256], index: 0, kind: input, shape index: {}]   ;;  %s128_s1 = inlined_call_operand.vmem [shape: f32[256], index: 1, kind: output, shape index: {}]  }
   0x2   :  { %v3_v1 = vsub.s32 127, %v2_v0 }
   0x4   :  { %4 = vset.pattern.permute.xlu0 %v3_v1 }
   0x5   :  { %v45_v2 = vld [vmem:[#allocation1] sm:$0x3]  ;;  %v22_v3 = vld [vmem:[%s127_s0] sm:$0x3]  ;;  %v60_v10 = vshrl.u32 %v2_v0, 7 }
   0x6   :  { %46 = vst [vmem:[#allocation0] sm:$0x3] %v45_v2 }
   0x7   :  { %23 = vst [vmem:[#allocation1 + $0x2] sm:$0x3] %v22_v3  ;;  %vm61_vm0 = vcmp.lt.s32.totalorder %v60_v10, 2 }
   0xd   :  { %v48_v4 = vld [vmem:[#allocation0 + $0x7] ss:$-1 sm:$0xff] }
   0xe   :  { %v49_v5 = vrot.slane %v48_v4, 6  ;;  %v42_v6 = vld [vmem:[#allocation1 + $0x2] sm:$0x3] }
   0xf   :  { %44 = vst [vmem:[#allocation0 + $0x8] sm:$0x3] %v42_v6 }
  0x10   :  { %50 = vperm.xlu0 %4, %v49_v5  }
  0x16   :  { %v55_v7 = vld [vmem:[#allocation0 + $0xf] ss:$-1 sm:$0xff] }
  0x17   :  { %v56_v8 = vrot.slane %v55_v7, 6 }
  0x19   :  { %57 = vperm.xlu0 %4, %v56_v8  }
  0x82   :  { %v51_v9 = vpop.permute.xlu0 %50 }
  0x83   :  { %52 = vst [vmem:[#allocation2] sm:$0xff] %v51_v9 }
  0x8b   :  { %v58_v11 = vpop.permute.xlu0 %57 }
  0x8c   :  { %62 = vst.msk [vmem:[#allocation2] sm:$0xff] %vm61_vm0, %v58_v11 }
  0x93   :  { %v65_v12 = vld [vmem:[#allocation2] sm:$0x3] }
  0x94   :  { %68 = vst [vmem:[#allocation3] sm:$0x3] %v65_v12 }
  0x9b   :  { %v85_v13 = vld [vmem:[#allocation3] sm:$0x3] }
  0x9c   :  { %86 = vst [vmem:[%s128_s1] sm:$0x3] %v85_v13 }

// kernel: _mel_transform_impl.1
= control target key start
LH: loop header
LB: loop body
LE: loop exit
PB: predicated region body
PF: predicated region fallthrough
CT: control target
= control target key end

     0   :  { %9 = vsyncpa [#allocation5], 0  ;;  %s1430_s0 = inlined_call_operand.vmem [shape: f32[24,200], index: 0, kind: input, shape index: {}]   ;;  %s1431_s1 = inlined_call_operand.hbm [shape: f32[200,512], index: 1, kind: input, shape index: {}]   ;;  %s1432_s2 = inlined_call_operand.hbm [shape: f32[200,512], index: 2, kind: input, shape index: {}]   ;;  %s1433_s3 = inlined_call_operand.hbm [shape: f32[256,128], index: 3, kind: input, shape index: {}]   ;;  %s1434_s4 = inlined_call_operand.hbm [shape: f32[16,128], index: 4, kind: output, shape index: {}]  }
   0x1   :  { %10 = vsyncpa [#allocation8], 0 }
   0x2   :  { %11 = vsyncpa [#allocation6], 0 }
   0x3   :  { %13 = vsyncpa [#allocation6 + $0x1], 0  ;;  %s1260_s15 = smov 0   ;;  %s1262_s16 = smov 0  }
   0x4   :  { %s1264_s17 = smov 0   ;;  %s1266_s18 = smov 0  }
   0x5 LB: > { %s1281_s19 = sadd.s32 4294967295, %s1226_s18   ;;  %s963_s20 = sadd.s32 4294967294, %s1226_s18   ;;  %s1226_s18 = sphi %s1266_s18, %s1442_s18   ;;  %s1222_s17 = sphi %s1264_s17, %s1441_s17   ;;  %s1218_s16 = sphi %s1262_s16, %s1440_s16   ;;  %s1214_s15 = sphi %s1260_s15, %s1439_s15  }
   0x6   : > { %s1285_s21 = sadd.s32 1, %s1226_s18   ;;  %s89_s22 = sadd.s32 1, %s1222_s17 }
   0x7   : > { %s86_s23 = ssub.s32 %s1226_s18, %s1285_s21  ;;  %p99_p0 = scmp.ne.s32.totalorder %s1222_s17, %s1218_s16 }
   0x8   : > { %p87_p1 = scmp.eq.s32.totalorder %s86_s23, 0  ;;  %p100_p2 = scmp.eq.s32.totalorder %s1281_s19, 1 }
   0x9   : > { %p105_p3 = scmp.ne.s32.totalorder %s1218_s16, %s1214_s15  ;;  %p106_p4 = scmp.eq.s32.totalorder %s963_s20, 1 }
   0xa   : > { %s1296_s24 = scalar_select %p87_p1, %s1222_s17, %s89_s22  }
   0xb   : > { %p1298_p5 = por %p100_p2, %p99_p0  ;;  %p1302_p6 = por %p106_p4, %p105_p3 }
   0xc   : > { %p964_p7 = scmp.ge.s32.totalorder %s1226_s18, 1  ;;  %p113_p8 = scmp.lt.s32.totalorder %s1226_s18, 3 }
   0xd   : > { %p1018_p9 = scmp.eq.s32.totalorder %s1281_s19, 0  ;;  %s138_s30 = sshll.u32 %s1432_s2, 4  ;;  %s139_s30 = int_to_ptr.hbm [resolvable:$true] %s138_s30 }
   0xe   : > { %p1309_p10 = pnand %p964_p7, %p113_p8  ;;  %s124_s7 = sshll.u32 %s1431_s1, 4  ;;  %s125_s7 = int_to_ptr.hbm [resolvable:$true] %s124_s7 }
   0xf   : > { %s1228_s9 = smov [#allocation7]   ;;  %s1229_s11 = smov 512  }
  0x10   : > { %p1004_p11 = pneg %p1309_p10  ;;  %s140_s10 = sshll.u32 %s1228_s9, 4  ;;  %s141_s10 = int_to_ptr.vmem [resolvable:$true] %s140_s10 }
  0x11   : > { %s1230_s12 = smov 32   ;;  %s1231_s13 = smov [#allocation4]  }
  0x12   : > { %p1323_p12 = pnand %p1018_p9, %p1004_p11  ;;  %s126_s14 = sshll.u32 %s1231_s13, 4  ;;  %s127_s14 = int_to_ptr.vmem [resolvable:$true] %s126_s14 }
  0x13   : > { %s152_s23 = sshll.u32 %s1433_s3, 4  ;;  %s1232_s28 = smov [#allocation9]   ;;  %s153_s23 = int_to_ptr.hbm [resolvable:$true] %s152_s23 }
  0x14   : > { %1010 = dma.hbm_to_vmem [thread:$0]  (!%p1323_p12), %s139_s30, 12800, %s141_s10, [#allocation8], %s1229_s11, %s1229_s11, %s1230_s12  }
  0x15   : > { %1007 = dma.hbm_to_vmem [thread:$0]  (!%p1323_p12), %s125_s7, 12800, %s127_s14, [#allocation5], %s1229_s11, %s1229_s11, %s1230_s12  }
  0x16   : > { %s154_s29 = sshll.u32 %s1232_s28, 4  ;;  %s1233_s5 = smov 128   ;;  %s155_s29 = int_to_ptr.vmem [resolvable:$true] %s154_s29 }
  0x17   : > { %s1234_s6 = smov 8   ;;  %170 = sbr.rel (%p1309_p10) target bundleno = 434 (0x1b2), region = 32 }
  0x18   : > { %1013 = dma.hbm_to_vmem [thread:$0]  (!%p1323_p12), %s153_s23, 4096, %s155_s29, [#allocation8], %s1233_s5, %s1233_s5, %s1234_s6  }
  0x1c   : > { %1199 = dma.done.wait (%p1018_p9), [#allocation5], 12800  }
  0x1d   : > { %1201 = vsyncadd (%p1018_p9), [#allocation5], 4294954496 }
  0x1e   : > { %1203 = dma.done.wait (%p1018_p9), [#allocation8], 16896  }
  0x1f   : > { %1205 = vsyncadd (%p1018_p9), [#allocation8], 4294950400  ;;  %s197_s30 = sand.u32 1, %s1218_s16   ;;  %s973_s7 = sshll.u32 %s1281_s19, 3 }
  0x20   : > { %s1350_s27 = sshll.u32 %s197_s30, 3  ;;  %s201_s8 = sshra.s32 %s973_s7, 3 }
  0x21   : > { %s989_s9 = sshll.u32 %s201_s8, 4  ;;  %s199_s13 = scalar_lea.vmem [#allocation10], %s1350_s27 }
  0x22   : > { %s205_s12 = scalar_lea.vmem %s1430_s0, %s989_s9 }
  0x23   : > { %v216_v0 = vld [vmem:[%s205_s12] sm:$0xff]  ;;  %v218_v1 = vld [vmem:[%s205_s12 + $0x8] sm:$0xff]  ;;  %v220_v2 = vld [vmem:[%s205_s12 + $0x10] sm:$0xff] }
  0x24   : > { %217 = vst [vmem:[#allocation2 + $0x10] sm:$0xff] %v216_v0  ;;  %v222_v3 = vld [vmem:[%s205_s12 + $0x18] sm:$0xff] }
  0x25   : > { %219 = vst [vmem:[#allocation2] sm:$0xff] %v218_v1 }
  0x26   : > { %221 = vst [vmem:[#allocation2 + $0x18] sm:$0xff] %v220_v2 }
  0x27   : > { %223 = vst [vmem:[#allocation2 + $0x8] sm:$0xff] %v222_v3 }
  0x28   : > { %229 = vsyncadd [#allocation3], 512 }
  0x29   : > { %1206 = dma.done.wait [#allocation3], 512 }
  0x2a   : > { %1207 = vsyncadd [#allocation3], 4294966784  ;;  %v400_v4 = vld [vmem:[#allocation7 + $0x1e0] sm:$0xff]  ;;  %v437_v6 = vld [vmem:[#allocation7 + $0x308] sm:$0xff]  ;;  %vm444_vm0 = vcmask 1046528   ;;  %vm452_vm1 = vcmask 588800   ;;  %s868_s22 = scalar_lea.hbm %s1434_s4, %s973_s7 }
  0x2b   : > { %v436_v5 = vld [vmem:[#allocation7 + $0x300] sm:$0xff]  ;;  %455 = vmatpush.msra.mxu0 %v400_v4  ;;  %v433_v9 = vld [vmem:[#allocation7 + $0x2e8] sm:$0xff]  ;;  %522 = vmatpush.msra.mxu3 %v437_v6  ;;  %v402_v10 = vld [vmem:[#allocation7 + $0x1f0] sm:$0xff]  ;;  %s870_s23 = sshll.u32 %s199_s13, 4  ;;  %s872_s28 = sshll.u32 %s868_s22, 4  ;;  %s871_s23 = int_to_ptr.vmem [resolvable:$true] %s870_s23  ;;  %s873_s28 = int_to_ptr.hbm [resolvable:$true] %s872_s28 }
  0x2c   : > { %482 = vmatpush.msra.mxu2 %v436_v5  ;;  %v396_v7 = vld [vmem:[#allocation7 + $0x1c0] sm:$0xff]  ;;  %v429_v13 = vld [vmem:[#allocation7 + $0x2c8] sm:$0xff]  ;;  %v398_v14 = vld [vmem:[#allocation7 + $0x1d0] sm:$0xff]  ;;  %535 = vmatpush.msra.mxu1 %v402_v10  ;;  %s858_s29 = scalar_lea.sflag [#allocation6], %s197_s30  ;;  %s1168_s5 = sshra.s32 %s873_s28, 4  ;;  %s1169_s5 = int_to_ptr.hbm [resolvable:$true] %s1168_s5 }
  0x2d   : > { %v432_v8 = vld [vmem:[#allocation7 + $0x2e0] sm:$0xff]  ;;  %456 = vmatpush.msra.mxu0 %v396_v7  ;;  %523 = vmatpush.msra.mxu3 %v433_v9  ;;  %v425_v17 = vld [vmem:[#allocation7 + $0x2a8] sm:$0xff]  ;;  %v394_v18 = vld [vmem:[#allocation7 + $0x1b0] sm:$0xff]  ;;  %s1170_s6 = scalar_lea.hbm %s1169_s5, 8  ;;  %s1174_s8 = scalar_lea.hbm %s1434_s4, 16 }
  0x2e   : > { %v392_v11 = vld [vmem:[#allocation7 + $0x1a0] sm:$0xff]  ;;  %483 = vmatpush.msra.mxu2 %v432_v8  ;;  %536 = vmatpush.msra.mxu1 %v398_v14  ;;  %v421_v21 = vld [vmem:[#allocation7 + $0x288] sm:$0xff]  ;;  %v390_v22 = vld [vmem:[#allocation7 + $0x190] sm:$0xff]  ;;  %p1171_p13 = scmp.ne.s32.totalorder %s1169_s5, %s1170_s6  ;;  %p1175_p2 = scmp.lt.s32.totalorder %s1169_s5, %s1434_s4 }
  0x2f   : > { %v428_v12 = vld [vmem:[#allocation7 + $0x2c0] sm:$0xff]  ;;  %457 = vmatpush.msra.mxu0 %v392_v11  ;;  %524 = vmatpush.msra.mxu3 %v429_v13  ;;  %v417_v25 = vld [vmem:[#allocation7 + $0x268] sm:$0xff]  ;;  %v386_v26 = vld [vmem:[#allocation7 + $0x170] sm:$0xff]  ;;  %p1176_p3 = scmp.lt.s32.totalorder %s1174_s8, %s1170_s6 }
  0x30   : > { %v388_v15 = vld [vmem:[#allocation7 + $0x180] sm:$0xff]  ;;  %484 = vmatpush.msra.mxu2 %v428_v12  ;;  %537 = vmatpush.msra.mxu1 %v394_v18  ;;  %v413_v29 = vld [vmem:[#allocation7 + $0x248] sm:$0xff]  ;;  %v382_v30 = vld [vmem:[#allocation7 + $0x150] sm:$0xff]  ;;  %p1172_p0 = pnand %p1171_p13, %p1298_p5 }
  0x31   : > { %v424_v16 = vld [vmem:[#allocation7 + $0x2a0] sm:$0xff]  ;;  %458 = vmatpush.msra.mxu0 %v388_v15  ;;  %525 = vmatpush.msra.mxu3 %v425_v17  ;;  %v409_v33 = vld [vmem:[#allocation7 + $0x228] sm:$0xff]  ;;  %v378_v34 = vld [vmem:[#allocation7 + $0x130] sm:$0xff]  ;;  %p1177_p4 = por %p1176_p3, %p1175_p2 }
  0x32   : > { %v384_v19 = vld [vmem:[#allocation7 + $0x160] sm:$0xff]  ;;  %485 = vmatpush.msra.mxu2 %v424_v16  ;;  %538 = vmatpush.msra.mxu1 %v390_v22  ;;  %v405_v37 = vld [vmem:[#allocation7 + $0x208] sm:$0xff]  ;;  %v374_v39 = vld [vmem:[#allocation7 + $0x110] sm:$0xff]  ;;  %p1173_p1 = pneg %p1172_p0 }
  0x33   : > { %v420_v20 = vld [vmem:[#allocation7 + $0x280] sm:$0xff]  ;;  %459 = vmatpush.msra.mxu0 %v384_v19  ;;  %526 = vmatpush.msra.mxu3 %v421_v21  ;;  %v401_v38 = vld [vmem:[#allocation7 + $0x1e8] sm:$0xff]  ;;  %v438_v40 = vld [vmem:[#allocation7 + $0x310] sm:$0xff] }
  0x34   : > { %v380_v23 = vld [vmem:[#allocation7 + $0x140] sm:$0xff]  ;;  %486 = vmatpush.msra.mxu2 %v420_v20  ;;  %539 = vmatpush.msra.mxu1 %v386_v26  ;;  %v397_v42 = vld [vmem:[#allocation7 + $0x1c8] sm:$0xff]  ;;  %v370_v43 = vld [vmem:[#allocation7 + $0xf0] sm:$0xff]  ;;  %p1178_p7 = pnand %p1177_p4, %p1173_p1 }
  0x35   : > { %v416_v24 = vld [vmem:[#allocation7 + $0x260] sm:$0xff]  ;;  %460 = vmatpush.msra.mxu0 %v380_v23  ;;  %527 = vmatpush.msra.mxu3 %v417_v25  ;;  %v434_v44 = vld [vmem:[#allocation7 + $0x2f0] sm:$0xff]  ;;  %v393_v46 = vld [vmem:[#allocation7 + $0x1a8] sm:$0xff] }
  0x36   : > { %v376_v27 = vld [vmem:[#allocation7 + $0x120] sm:$0xff]  ;;  %487 = vmatpush.msra.mxu2 %v416_v24  ;;  %540 = vmatpush.msra.mxu1 %v382_v30  ;;  %v366_v47 = vld [vmem:[#allocation7 + $0xd0] sm:$0xff]  ;;  %v389_v50 = vld [vmem:[#allocation7 + $0x188] sm:$0xff] }
  0x37   : > { %v412_v28 = vld [vmem:[#allocation7 + $0x240] sm:$0xff]  ;;  %461 = vmatpush.msra.mxu0 %v376_v27  ;;  %528 = vmatpush.msra.mxu3 %v413_v29  ;;  %v430_v48 = vld [vmem:[#allocation7 + $0x2d0] sm:$0xff]  ;;  %v385_v54 = vld [vmem:[#allocation7 + $0x168] sm:$0xff] }
  0x38   : > { %v372_v31 = vld [vmem:[#allocation7 + $0x100] sm:$0xff]  ;;  %488 = vmatpush.msra.mxu2 %v412_v28  ;;  %541 = vmatpush.msra.mxu1 %v378_v34  ;;  %v362_v51 = vld [vmem:[#allocation7 + $0xb0] sm:$0xff]  ;;  %v381_v58 = vld [vmem:[#allocation7 + $0x148] sm:$0xff] }
  0x39   : > { %v408_v32 = vld [vmem:[#allocation7 + $0x220] sm:$0xff]  ;;  %462 = vmatpush.msra.mxu0 %v372_v31  ;;  %529 = vmatpush.msra.mxu3 %v409_v33  ;;  %v426_v52 = vld [vmem:[#allocation7 + $0x2b0] sm:$0xff]  ;;  %v239_v62 = vld [vmem:[#allocation2 + $0x8] sm:$0x1] }
  0x3a   : > { %v368_v35 = vld [vmem:[#allocation7 + $0xe0] sm:$0xff]  ;;  %489 = vmatpush.msra.mxu2 %v408_v32  ;;  %542 = vmatpush.msra.mxu1 %v374_v39  ;;  %v358_v55 = vld [vmem:[#allocation7 + $0x90] sm:$0xff]  ;;  %v377_v0 = vld [vmem:[#allocation7 + $0x128] sm:$0xff]  ;;  %v449_v6 = vrot.slane %v239_v62, 1 }
  0x3b   : > { %v404_v36 = vld [vmem:[#allocation7 + $0x200] sm:$0xff]  ;;  %463 = vmatpush.msra.mxu0 %v368_v35  ;;  %530 = vmatpush.msra.mxu3 %v405_v37  ;;  %v422_v56 = vld [vmem:[#allocation7 + $0x290] sm:$0xff]  ;;  %v373_v4 = vld [vmem:[#allocation7 + $0x108] sm:$0xff] }
  0x3c   : > { %490 = vmatpush.msra.mxu2 %v404_v36  ;;  %v364_v41 = vld [vmem:[#allocation7 + $0xc0] sm:$0xff]  ;;  %543 = vmatpush.msra.mxu1 %v370_v43  ;;  %v354_v59 = vld [vmem:[#allocation7 + $0x70] sm:$0xff]  ;;  %v403_v9 = vld [vmem:[#allocation7 + $0x1f8] sm:$0xff] }
  0x3d   : > { %562 = vmatpush.msrb.mxu3 %v438_v40  ;;  %v360_v45 = vld [vmem:[#allocation7 + $0xa0] sm:$0xff]  ;;  %464 = vmatpush.msra.mxu0 %v364_v41  ;;  %v418_v60 = vld [vmem:[#allocation7 + $0x270] sm:$0xff]  ;;  %v369_v10 = vld [vmem:[#allocation7 + $0xe8] sm:$0xff] }
  0x3e   : > { %495 = vmatpush.msrb.mxu2 %v401_v38  ;;  %v356_v49 = vld [vmem:[#allocation7 + $0x80] sm:$0xff]  ;;  %544 = vmatpush.msra.mxu1 %v366_v47  ;;  %v350_v1 = vld [vmem:[#allocation7 + $0x50] sm:$0xff]  ;;  %v399_v13 = vld [vmem:[#allocation7 + $0x1d8] sm:$0xff] }
  0x3f   : > { %563 = vmatpush.msrb.mxu3 %v434_v44  ;;  %465 = vmatpush.msra.mxu0 %v360_v45  ;;  %v352_v53 = vld [vmem:[#allocation7 + $0x60] sm:$0xff]  ;;  %v414_v2 = vld [vmem:[#allocation7 + $0x250] sm:$0xff]  ;;  %v365_v17 = vld [vmem:[#allocation7 + $0xc8] sm:$0xff] }
  0x40   : > { %496 = vmatpush.msrb.mxu2 %v397_v42  ;;  %545 = vmatpush.msra.mxu1 %v362_v51  ;;  %v348_v57 = vld [vmem:[#allocation7 + $0x40] sm:$0xff]  ;;  %v346_v7 = vld [vmem:[#allocation7 + $0x30] sm:$0xff]  ;;  %v395_v18 = vld [vmem:[#allocation7 + $0x1b8] sm:$0xff] }
  0x41   : > { %564 = vmatpush.msrb.mxu3 %v430_v48  ;;  %466 = vmatpush.msra.mxu0 %v356_v49  ;;  %v237_v61 = vld [vmem:[#allocation2] sm:$0xfe]  ;;  %v410_v8 = vld [vmem:[#allocation7 + $0x230] sm:$0xff]  ;;  %v361_v21 = vld [vmem:[#allocation7 + $0xa8] sm:$0xff] }
  0x42   : > { %497 = vmatpush.msrb.mxu2 %v393_v46  ;;  %546 = vmatpush.msra.mxu1 %v358_v55  ;;  %v344_v63 = vld [vmem:[#allocation7 + $0x20] sm:$0xff]  ;;  %v448_v5 = vrot.slane %v237_v61, 1  ;;  %v342_v11 = vld [vmem:[#allocation7 + $0x10] sm:$0xff]  ;;  %v391_v22 = vld [vmem:[#allocation7 + $0x198] sm:$0xff] }
  0x43   : > { %565 = vmatpush.msrb.mxu3 %v426_v52  ;;  %467 = vmatpush.msra.mxu0 %v352_v53  ;;  %v340_v3 = vld [vmem:[#allocation7] sm:$0xff]  ;;  %v406_v12 = vld [vmem:[#allocation7 + $0x210] sm:$0xff]  ;;  %v357_v25 = vld [vmem:[#allocation7 + $0x88] sm:$0xff] }
  0x44   : > { %498 = vmatpush.msrb.mxu2 %v389_v50  ;;  %547 = vmatpush.msra.mxu1 %v354_v59  ;;  %v1359_v14 = vsel %vm444_vm0, %v448_v5, %v449_v6  ;;  %v300_v15 = vld [vmem:[#allocation4 + $0x1e0] sm:$0xff]  ;;  %v387_v26 = vld [vmem:[#allocation7 + $0x178] sm:$0xff]  ;;  %v353_v29 = vld [vmem:[#allocation7 + $0x68] sm:$0xff] }
  0x45   : > { %566 = vmatpush.msrb.mxu3 %v422_v56  ;;  %468 = vmatpush.msra.mxu0 %v348_v57  ;;  %v336_v16 = vld [vmem:[#allocation4 + $0x300] sm:$0xff]  ;;  %v383_v30 = vld [vmem:[#allocation7 + $0x158] sm:$0xff]  ;;  %v349_v33 = vld [vmem:[#allocation7 + $0x48] sm:$0xff] }
  0x46   : > { %499 = vmatpush.msrb.mxu2 %v385_v54  ;;  %548 = vmatpush.msra.mxu1 %v350_v1  ;;  %v296_v19 = vld [vmem:[#allocation4 + $0x1c0] sm:$0xff]  ;;  %v379_v34 = vld [vmem:[#allocation7 + $0x138] sm:$0xff]  ;;  %v345_v37 = vld [vmem:[#allocation7 + $0x28] sm:$0xff] }
  0x47   : > { %567 = vmatpush.msrb.mxu3 %v418_v60  ;;  %469 = vmatpush.msra.mxu0 %v344_v63  ;;  %v332_v20 = vld [vmem:[#allocation4 + $0x2e0] sm:$0xff]  ;;  %v375_v38 = vld [vmem:[#allocation7 + $0x118] sm:$0xff]  ;;  %v236_v39 = vld [vmem:[#allocation2 + $0x10] sm:$0xfe] }
  0x48   : > { %500 = vmatpush.msrb.mxu2 %v381_v58  ;;  %549 = vmatpush.msra.mxu1 %v346_v7  ;;  %v292_v23 = vld [vmem:[#allocation4 + $0x1a0] sm:$0xff]  ;;  %v238_v40 = vld [vmem:[#allocation2 + $0x18] sm:$0x1]  ;;  %v341_v43 = vld [vmem:[#allocation7 + $0x8] sm:$0xff]  ;;  %v445_v46 = vrot.slane %v236_v39, 1 }
  0x49   : > { %568 = vmatpush.msrb.mxu3 %v414_v2  ;;  %470 = vmatpush.msra.mxu0 %v340_v3  ;;  %v328_v24 = vld [vmem:[#allocation4 + $0x2c0] sm:$0xff]  ;;  %v371_v44 = vld [vmem:[#allocation7 + $0xf8] sm:$0xff]  ;;  %v446_v47 = vrot.slane %v238_v40, 1  ;;  %v302_v56 = vld [vmem:[#allocation4 + $0x1f0] sm:$0xff] }
  0x4a   : > { %501 = vmatpush.msrb.mxu2 %v377_v0  ;;  %550 = vmatpush.msra.mxu1 %v342_v11  ;;  %v288_v27 = vld [vmem:[#allocation4 + $0x180] sm:$0xff]  ;;  %v439_v48 = vld [vmem:[#allocation7 + $0x318] sm:$0xff]  ;;  %v298_v60 = vld [vmem:[#allocation4 + $0x1d0] sm:$0xff] }
  0x4b   : > { %569 = vmatpush.msrb.mxu3 %v410_v8  ;;  %575 = vmatpush.msrb.mxu0 %v403_v9  ;;  %v324_v28 = vld [vmem:[#allocation4 + $0x2a0] sm:$0xff]  ;;  %v367_v50 = vld [vmem:[#allocation7 + $0xd8] sm:$0xff]  ;;  %v1366_v54 = vsel %vm444_vm0, %v445_v46, %v446_v47  ;;  %v294_v0 = vld [vmem:[#allocation4 + $0x1b0] sm:$0xff] }
  0x4c   : > { %502 = vmatpush.msrb.mxu2 %v373_v4  ;;  %977 = vmatmul.msk.f32.vlgmr.msra.gmra.mxu3 %vm452_vm1, %v1359_v14  ;;  %v284_v31 = vld [vmem:[#allocation4 + $0x160] sm:$0xff]  ;;  %v435_v52 = vld [vmem:[#allocation7 + $0x2f8] sm:$0xff]  ;;  %v290_v4 = vld [vmem:[#allocation4 + $0x190] sm:$0xff] }
  0x4d   : > { %570 = vmatpush.msrb.mxu3 %v406_v12  ;;  %576 = vmatpush.msrb.mxu0 %v399_v13  ;;  %v320_v32 = vld [vmem:[#allocation4 + $0x280] sm:$0xff]  ;;  %v363_v55 = vld [vmem:[#allocation7 + $0xb8] sm:$0xff]  ;;  %v286_v8 = vld [vmem:[#allocation4 + $0x170] sm:$0xff] }
  0x4e   : > { %503 = vmatpush.msrb.mxu2 %v369_v10  ;;  %645 = vmatpush.msrb.mxu1 %v336_v16  ;;  %v280_v35 = vld [vmem:[#allocation4 + $0x140] sm:$0xff]  ;;  %v431_v57 = vld [vmem:[#allocation7 + $0x2d8] sm:$0xff]  ;;  %v282_v12 = vld [vmem:[#allocation4 + $0x150] sm:$0xff] }
  0x4f   : > { %618 = vmatpush.msra.mxu3 %v300_v15  ;;  %577 = vmatpush.msrb.mxu0 %v395_v18  ;;  %v316_v36 = vld [vmem:[#allocation4 + $0x260] sm:$0xff]  ;;  %v359_v59 = vld [vmem:[#allocation7 + $0x98] sm:$0xff]  ;;  %v337_v16 = vld [vmem:[#allocation4 + $0x308] sm:$0xff] }
  0x50   : > { %504 = vmatpush.msrb.mxu2 %v365_v17  ;;  %646 = vmatpush.msrb.mxu1 %v332_v20  ;;  %v276_v41 = vld [vmem:[#allocation4 + $0x120] sm:$0xff]  ;;  %v427_v61 = vld [vmem:[#allocation7 + $0x2b8] sm:$0xff]  ;;  %v278_v17 = vld [vmem:[#allocation4 + $0x130] sm:$0xff] }
  0x51   : > { %619 = vmatpush.msra.mxu3 %v296_v19  ;;  %578 = vmatpush.msrb.mxu0 %v391_v22  ;;  %v312_v42 = vld [vmem:[#allocation4 + $0x240] sm:$0xff]  ;;  %v355_v63 = vld [vmem:[#allocation7 + $0x78] sm:$0xff]  ;;  %v333_v20 = vld [vmem:[#allocation4 + $0x2e8] sm:$0xff] }
  0x52   : > { %505 = vmatpush.msrb.mxu2 %v361_v21  ;;  %647 = vmatpush.msrb.mxu1 %v328_v24  ;;  %v272_v45 = vld [vmem:[#allocation4 + $0x100] sm:$0xff]  ;;  %v423_v1 = vld [vmem:[#allocation7 + $0x298] sm:$0xff]  ;;  %v1373_v21 = vld [vmem:[#allocation2 + $0x10] sm:$0xff] }
  0x53   : > { %620 = vmatpush.msra.mxu3 %v292_v23  ;;  %579 = vmatpush.msrb.mxu0 %v387_v26  ;;  %v308_v49 = vld [vmem:[#allocation4 + $0x220] sm:$0xff]  ;;  %v351_v3 = vld [vmem:[#allocation7 + $0x58] sm:$0xff]  ;;  %v301_v22 = vld [vmem:[#allocation4 + $0x1e8] sm:$0xff] }
  0x54   : > { %506 = vmatpush.msrb.mxu2 %v357_v25  ;;  %648 = vmatpush.msrb.mxu1 %v324_v28  ;;  %v268_v51 = vld [vmem:[#allocation4 + $0xe0] sm:$0xff]  ;;  %v419_v5 = vld [vmem:[#allocation7 + $0x278] sm:$0xff]  ;;  %v274_v23 = vld [vmem:[#allocation4 + $0x110] sm:$0xff] }
  0x55   : > { %621 = vmatpush.msra.mxu3 %v288_v27  ;;  %580 = vmatpush.msrb.mxu0 %v383_v30  ;;  %v304_v53 = vld [vmem:[#allocation4 + $0x200] sm:$0xff]  ;;  %v347_v7 = vld [vmem:[#allocation7 + $0x38] sm:$0xff]  ;;  %v338_v24 = vld [vmem:[#allocation4 + $0x310] sm:$0xff] }
  0x56   : > { %507 = vmatpush.msrb.mxu2 %v353_v29  ;;  %649 = vmatpush.msrb.mxu1 %v320_v32  ;;  %v264_v58 = vld [vmem:[#allocation4 + $0xc0] sm:$0xff]  ;;  %v415_v9 = vld [vmem:[#allocation7 + $0x258] sm:$0xff]  ;;  %v329_v25 = vld [vmem:[#allocation4 + $0x2c8] sm:$0xff] }
  0x57   : > { %622 = vmatpush.msra.mxu3 %v284_v31  ;;  %581 = vmatpush.msrb.mxu0 %v379_v34  ;;  %v260_v62 = vld [vmem:[#allocation4 + $0xa0] sm:$0xff]  ;;  %v343_v11 = vld [vmem:[#allocation7 + $0x18] sm:$0xff]  ;;  %v297_v26 = vld [vmem:[#allocation4 + $0x1c8] sm:$0xff] }
  0x58   : > { %508 = vmatpush.msrb.mxu2 %v349_v33  ;;  %650 = vmatpush.msrb.mxu1 %v316_v36  ;;  %v256_v2 = vld [vmem:[#allocation4 + $0x80] sm:$0xff]  ;;  %v411_v13 = vld [vmem:[#allocation7 + $0x238] sm:$0xff]  ;;  %v270_v27 = vld [vmem:[#allocation4 + $0xf0] sm:$0xff] }
  0x59   : > { %623 = vmatpush.msra.mxu3 %v280_v35  ;;  %582 = vmatpush.msrb.mxu0 %v375_v38  ;;  %v252_v6 = vld [vmem:[#allocation4 + $0x60] sm:$0xff]  ;;  %v407_v18 = vld [vmem:[#allocation7 + $0x218] sm:$0xff]  ;;  %v334_v28 = vld [vmem:[#allocation4 + $0x2f0] sm:$0xff] }
  0x5a   : > { %509 = vmatpush.msrb.mxu2 %v345_v37  ;;  %651 = vmatpush.msrb.mxu1 %v312_v42  ;;  %v248_v10 = vld [vmem:[#allocation4 + $0x40] sm:$0xff]  ;;  %v325_v29 = vld [vmem:[#allocation4 + $0x2a8] sm:$0xff]  ;;  %v266_v31 = vld [vmem:[#allocation4 + $0xd0] sm:$0xff] }
  0x5b   : > { %624 = vmatpush.msra.mxu3 %v276_v41  ;;  %583 = vmatpush.msrb.mxu0 %v371_v44  ;;  %v244_v15 = vld [vmem:[#allocation4 + $0x20] sm:$0xff]  ;;  %v293_v30 = vld [vmem:[#allocation4 + $0x1a8] sm:$0xff]  ;;  %v330_v32 = vld [vmem:[#allocation4 + $0x2d0] sm:$0xff] }
  0x5c   : > { %510 = vmatpush.msrb.mxu2 %v341_v43  ;;  %652 = vmatpush.msrb.mxu1 %v308_v49  ;;  %v240_v19 = vld [vmem:[#allocation4] sm:$0xff]  ;;  %v321_v33 = vld [vmem:[#allocation4 + $0x288] sm:$0xff]  ;;  %v262_v35 = vld [vmem:[#allocation4 + $0xb0] sm:$0xff] }
  0x5d   : > { %976 = vmatmul.msk.f32.vlgmr.msra.gmra.mxu2 %vm452_vm1, %v1359_v14  ;;  %625 = vmatpush.msra.mxu3 %v272_v45  ;;  %v289_v34 = vld [vmem:[#allocation4 + $0x188] sm:$0xff]  ;;  %v326_v36 = vld [vmem:[#allocation4 + $0x2b0] sm:$0xff]  ;;  %v1376_v38 = vld [vmem:[#allocation2] sm:$0xff] }
  0x5e   : > { %602 = vmatpush.msra.mxu2 %v439_v48  ;;  %584 = vmatpush.msrb.mxu0 %v367_v50  ;;  %v317_v37 = vld [vmem:[#allocation4 + $0x268] sm:$0xff]  ;;  %v258_v40 = vld [vmem:[#allocation4 + $0x90] sm:$0xff] }
  0x5f   : > { %626 = vmatpush.msra.mxu3 %v268_v51  ;;  %653 = vmatpush.msrb.mxu1 %v304_v53  ;;  %v285_v39 = vld [vmem:[#allocation4 + $0x168] sm:$0xff]  ;;  %v322_v41 = vld [vmem:[#allocation4 + $0x290] sm:$0xff] }
  0x60   : > { %603 = vmatpush.msra.mxu2 %v435_v52  ;;  %551 = vmatmul.f32.vlgmr.msra.gmra.mxu1 %v1366_v54  ;;  %v313_v42 = vld [vmem:[#allocation4 + $0x248] sm:$0xff]  ;;  %v254_v44 = vld [vmem:[#allocation4 + $0x70] sm:$0xff] }
  0x61   : > { %585 = vmatpush.msrb.mxu0 %v363_v55  ;;  %698 = vmatpush.msra.mxu1 %v302_v56  ;;  %v281_v43 = vld [vmem:[#allocation4 + $0x148] sm:$0xff]  ;;  %v318_v45 = vld [vmem:[#allocation4 + $0x270] sm:$0xff]  ;;  %v303_v55 = vld [vmem:[#allocation4 + $0x1f8] sm:$0xff] }
  0x62   : > { %604 = vmatpush.msra.mxu2 %v431_v57  ;;  %627 = vmatpush.msra.mxu3 %v264_v58  ;;  %v309_v46 = vld [vmem:[#allocation4 + $0x228] sm:$0xff]  ;;  %v250_v48 = vld [vmem:[#allocation4 + $0x50] sm:$0xff] }
  0x63   : > { %586 = vmatpush.msrb.mxu0 %v359_v59  ;;  %699 = vmatpush.msra.mxu1 %v298_v60  ;;  %v277_v47 = vld [vmem:[#allocation4 + $0x128] sm:$0xff]  ;;  %v314_v49 = vld [vmem:[#allocation4 + $0x250] sm:$0xff]  ;;  %v299_v59 = vld [vmem:[#allocation4 + $0x1d8] sm:$0xff] }
  0x64   : > { %471 = vmatmul.f32.vlgmr.msra.gmra.mxu0 %v1366_v54  ;;  %605 = vmatpush.msra.mxu2 %v427_v61  ;;  %v305_v50 = vld [vmem:[#allocation4 + $0x208] sm:$0xff]  ;;  %v246_v52 = vld [vmem:[#allocation4 + $0x30] sm:$0xff]  ;;  %v295_v61 = vld [vmem:[#allocation4 + $0x1b8] sm:$0xff] }
  0x65   : > { %628 = vmatpush.msra.mxu3 %v260_v62  ;;  %587 = vmatpush.msrb.mxu0 %v355_v63  ;;  %v273_v51 = vld [vmem:[#allocation4 + $0x108] sm:$0xff]  ;;  %v310_v53 = vld [vmem:[#allocation4 + $0x230] sm:$0xff] }
  0x66   : > { %700 = vmatpush.msra.mxu1 %v294_v0  ;;  %606 = vmatpush.msra.mxu2 %v423_v1  ;;  %v242_v56 = vld [vmem:[#allocation4 + $0x10] sm:$0xff]  ;;  %v269_v57 = vld [vmem:[#allocation4 + $0xe8] sm:$0xff]  ;;  %v287_v0 = vld [vmem:[#allocation4 + $0x178] sm:$0xff] }
  0x67   : > { %629 = vmatpush.msra.mxu3 %v256_v2  ;;  %588 = vmatpush.msrb.mxu0 %v351_v3  ;;  %v306_v58 = vld [vmem:[#allocation4 + $0x210] sm:$0xff]  ;;  %v265_v60 = vld [vmem:[#allocation4 + $0xc8] sm:$0xff]  ;;  %v283_v1 = vld [vmem:[#allocation4 + $0x158] sm:$0xff] }
  0x68   : > { %978 = vmatmul.msk.f32.vlgmr.msrb.gmra.mxu3 %vm452_vm1, %v1359_v14  ;;  %701 = vmatpush.msra.mxu1 %v290_v4  ;;  %v261_v62 = vld [vmem:[#allocation4 + $0xa8] sm:$0xff]  ;;  %v279_v3 = vld [vmem:[#allocation4 + $0x138] sm:$0xff] }
  0x69   : > { %607 = vmatpush.msra.mxu2 %v419_v5  ;;  %630 = vmatpush.msra.mxu3 %v252_v6  ;;  %v257_v63 = vld [vmem:[#allocation4 + $0x88] sm:$0xff]  ;;  %v275_v5 = vld [vmem:[#allocation4 + $0x118] sm:$0xff] }
  0x6a   : > { %511 = vmatmul.f32.vlgmr.msrb.gmra.mxu2 %v1366_v54  ;;  %589 = vmatpush.msrb.mxu0 %v347_v7  ;;  %v249_v2 = vld [vmem:[#allocation4 + $0x48] sm:$0xff]  ;;  %v271_v7 = vld [vmem:[#allocation4 + $0xf8] sm:$0xff] }
  0x6b   : > { %702 = vmatpush.msra.mxu1 %v286_v8  ;;  %608 = vmatpush.msra.mxu2 %v415_v9  ;;  %v245_v4 = vld [vmem:[#allocation4 + $0x28] sm:$0xff]  ;;  %v339_v8 = vld [vmem:[#allocation4 + $0x318] sm:$0xff] }
  0x6c   : > { %631 = vmatpush.msra.mxu3 %v248_v10  ;;  %590 = vmatpush.msrb.mxu0 %v343_v11  ;;  %v241_v6 = vld [vmem:[#allocation4 + $0x8] sm:$0xff]  ;;  %v267_v9 = vld [vmem:[#allocation4 + $0xd8] sm:$0xff] }
  0x6d   : > { %703 = vmatpush.msra.mxu1 %v282_v12  ;;  %609 = vmatpush.msra.mxu2 %v411_v13  ;;  %v335_v10 = vld [vmem:[#allocation4 + $0x2f8] sm:$0xff] }
  0x6e   : > { %632 = vmatpush.msra.mxu3 %v244_v15  ;;  %685 = vmatpush.msra.mxu0 %v337_v16  ;;  %v263_v11 = vld [vmem:[#allocation4 + $0xb8] sm:$0xff] }
  0x6f   : > { %704 = vmatpush.msra.mxu1 %v278_v17  ;;  %610 = vmatpush.msra.mxu2 %v407_v18  ;;  %v331_v12 = vld [vmem:[#allocation4 + $0x2d8] sm:$0xff] }
  0x70   : > { %633 = vmatpush.msra.mxu3 %v240_v19  ;;  %686 = vmatpush.msra.mxu0 %v333_v20  ;;  %v259_v13 = vld [vmem:[#allocation4 + $0x98] sm:$0xff] }
  0x71   : > { %634 = vmatmul.f32.vlgmr.msra.gmra.mxu3 %v1373_v21  ;;  %658 = vmatpush.msrb.mxu2 %v301_v22  ;;  %v327_v15 = vld [vmem:[#allocation4 + $0x2b8] sm:$0xff] }
  0x72   : > { %705 = vmatpush.msra.mxu1 %v274_v23  ;;  %725 = vmatpush.msrb.mxu3 %v338_v24  ;;  %v255_v16 = vld [vmem:[#allocation4 + $0x78] sm:$0xff] }
  0x73   : > { %687 = vmatpush.msra.mxu0 %v329_v25  ;;  %659 = vmatpush.msrb.mxu2 %v297_v26  ;;  %v323_v17 = vld [vmem:[#allocation4 + $0x298] sm:$0xff] }
  0x74   : > { %706 = vmatpush.msra.mxu1 %v270_v27  ;;  %726 = vmatpush.msrb.mxu3 %v334_v28  ;;  %v251_v18 = vld [vmem:[#allocation4 + $0x58] sm:$0xff]  ;;  %v798_v27 = vld [vmem:[#allocation9 + $0x70] sm:$0xff]  ;;  %v797_v28 = vld [vmem:[#allocation9 + $0x68] sm:$0xff] }
  0x75   : > { %688 = vmatpush.msra.mxu0 %v325_v29  ;;  %660 = vmatpush.msrb.mxu2 %v293_v30  ;;  %v319_v19 = vld [vmem:[#allocation4 + $0x278] sm:$0xff]  ;;  %v796_v29 = vld [vmem:[#allocation9 + $0x60] sm:$0xff] }
  0x76   : > { %707 = vmatpush.msra.mxu1 %v266_v31  ;;  %727 = vmatpush.msrb.mxu3 %v330_v32  ;;  %v247_v20 = vld [vmem:[#allocation4 + $0x38] sm:$0xff]  ;;  %v794_v31 = vld [vmem:[#allocation9 + $0x50] sm:$0xff]  ;;  %v793_v32 = vld [vmem:[#allocation9 + $0x48] sm:$0xff] }
  0x77   : > { %689 = vmatpush.msra.mxu0 %v321_v33  ;;  %661 = vmatpush.msrb.mxu2 %v289_v34  ;;  %v315_v22 = vld [vmem:[#allocation4 + $0x258] sm:$0xff]  ;;  %v792_v33 = vld [vmem:[#allocation9 + $0x40] sm:$0xff]  ;;  %v790_v34 = vld [vmem:[#allocation9 + $0x30] sm:$0xff] }
  0x78   : > { %708 = vmatpush.msra.mxu1 %v262_v35  ;;  %728 = vmatpush.msrb.mxu3 %v326_v36  ;;  %v243_v23 = vld [vmem:[#allocation4 + $0x18] sm:$0xff]  ;;  %v789_v35 = vld [vmem:[#allocation9 + $0x28] sm:$0xff]  ;;  %v788_v36 = vld [vmem:[#allocation9 + $0x20] sm:$0xff] }
  0x79   : > { %690 = vmatpush.msra.mxu0 %v317_v37  ;;  %980 = vmatmul.msk.f32.vlgmr.msrb.gmra.mxu1 %vm452_vm1, %v1376_v38  ;;  %v311_v24 = vld [vmem:[#allocation4 + $0x238] sm:$0xff] }
  0x7a   : > { %662 = vmatpush.msrb.mxu2 %v285_v39  ;;  %709 = vmatpush.msra.mxu1 %v258_v40  ;;  %v307_v25 = vld [vmem:[#allocation4 + $0x218] sm:$0xff]  ;;  %v785_v39 = vld [vmem:[#allocation9 + $0x8] sm:$0xff] }
  0x7b   : > { %729 = vmatpush.msrb.mxu3 %v322_v41  ;;  %691 = vmatpush.msra.mxu0 %v313_v42  ;;  %v799_v26 = vld [vmem:[#allocation9 + $0x78] sm:$0xff]  ;;  %v784_v41 = vld [vmem:[#allocation9] sm:$0xff] }
  0x7c   : > { %663 = vmatpush.msrb.mxu2 %v281_v43  ;;  %710 = vmatpush.msra.mxu1 %v254_v44  ;;  %v795_v30 = vld [vmem:[#allocation9 + $0x58] sm:$0xff]  ;;  %v814_v43 = vld [vmem:[#allocation9 + $0xf0] sm:$0xff] }
  0x7d   : > { %730 = vmatpush.msrb.mxu3 %v318_v45  ;;  %692 = vmatpush.msra.mxu0 %v309_v46  ;;  %v787_v37 = vld [vmem:[#allocation9 + $0x18] sm:$0xff]  ;;  %v813_v45 = vld [vmem:[#allocation9 + $0xe8] sm:$0xff]  ;;  %v812_v46 = vld [vmem:[#allocation9 + $0xe0] sm:$0xff] }
  0x7e   : > { %664 = vmatpush.msrb.mxu2 %v277_v47  ;;  %711 = vmatpush.msra.mxu1 %v250_v48  ;;  %v815_v42 = vld [vmem:[#allocation9 + $0xf8] sm:$0xff] }
  0x7f   : > { %731 = vmatpush.msrb.mxu3 %v314_v49  ;;  %693 = vmatpush.msra.mxu0 %v305_v50  ;;  %v811_v48 = vld [vmem:[#allocation9 + $0xd8] sm:$0xff]  ;;  %v810_v49 = vld [vmem:[#allocation9 + $0xd0] sm:$0xff] }
  0x80   : > { %665 = vmatpush.msrb.mxu2 %v273_v51  ;;  %591 = vmatmul.f32.vlgmr.msrb.gmra.mxu0 %v1366_v54  ;;  %v291_v54 = vld [vmem:[#allocation4 + $0x198] sm:$0xff]  ;;  %v809_v51 = vld [vmem:[#allocation9 + $0xc8] sm:$0xff] }
  0x81   : > { %712 = vmatpush.msra.mxu1 %v246_v52  ;;  %732 = vmatpush.msrb.mxu3 %v310_v53  ;;  %v808_v52 = vld [vmem:[#allocation9 + $0xc0] sm:$0xff] }
  0x82   : > { %738 = vmatpush.msrb.mxu0 %v303_v55  ;;  %979 = vmatmul.msk.f32.vlgmr.msra.gmra.mxu2 %vm452_vm1, %v1359_v14  ;;  %v253_v14 = vld [vmem:[#allocation4 + $0x68] sm:$0xff] }
  0x83   : > { %713 = vmatpush.msra.mxu1 %v242_v56  ;;  %666 = vmatpush.msrb.mxu2 %v269_v57  ;;  %v807_v56 = vld [vmem:[#allocation9 + $0xb8] sm:$0xff]  ;;  %v806_v57 = vld [vmem:[#allocation9 + $0xb0] sm:$0xff] }
  0x84   : > { %733 = vmatpush.msrb.mxu3 %v306_v58  ;;  %739 = vmatpush.msrb.mxu0 %v299_v59  ;;  %v805_v59 = vld [vmem:[#allocation9 + $0xa8] sm:$0xff] }
  0x85   : > { %714 = vmatmul.f32.vlgmr.msra.gmra.mxu1 %v1373_v21  ;;  %982 = vmatmul.msk.f32.vlgmr.msrb.gmra.mxu3 %vm452_vm1, %v1376_v38 }
  0x86   : > { %667 = vmatpush.msrb.mxu2 %v265_v60  ;;  %740 = vmatpush.msrb.mxu0 %v295_v61  ;;  %v804_v61 = vld [vmem:[#allocation9 + $0xa0] sm:$0xff] }
  0x87   : > { %816 = vmatpush.msra.mxu3 %v799_v26  ;;  %836 = vmatpush.msrb.mxu1 %v815_v42 }
  0x88   : > { %668 = vmatpush.msrb.mxu2 %v261_v62  ;;  %741 = vmatpush.msrb.mxu0 %v291_v54 }
  0x89   : > { %981 = vmatmul.msk.f32.vlgmr.msra.gmra.mxu0 %vm452_vm1, %v1376_v38  ;;  %817 = vmatpush.msra.mxu3 %v798_v27 }
  0x8a   : > { %669 = vmatpush.msrb.mxu2 %v257_v63  ;;  %742 = vmatpush.msrb.mxu0 %v287_v0  ;;  %v803_v0 = vld [vmem:[#allocation9 + $0x98] sm:$0xff] }
  0x8b   : > { %818 = vmatpush.msra.mxu3 %v797_v28  ;;  %837 = vmatpush.msrb.mxu1 %v814_v43 }
  0x8c   : > { %670 = vmatpush.msrb.mxu2 %v253_v14  ;;  %743 = vmatpush.msrb.mxu0 %v283_v1 }
  0x8d   : > { %819 = vmatpush.msra.mxu3 %v796_v29  ;;  %838 = vmatpush.msrb.mxu1 %v813_v45 }
  0x8e   : > { %671 = vmatpush.msrb.mxu2 %v249_v2  ;;  %744 = vmatpush.msrb.mxu0 %v279_v3  ;;  %v802_v3 = vld [vmem:[#allocation9 + $0x90] sm:$0xff] }
  0x8f   : > { %820 = vmatpush.msra.mxu3 %v795_v30  ;;  %839 = vmatpush.msrb.mxu1 %v812_v46 }
  0x90   : > { %672 = vmatpush.msrb.mxu2 %v245_v4  ;;  %745 = vmatpush.msrb.mxu0 %v275_v5  ;;  %v801_v5 = vld [vmem:[#allocation9 + $0x88] sm:$0xff] }
  0x91   : > { %821 = vmatpush.msra.mxu3 %v794_v31  ;;  %840 = vmatpush.msrb.mxu1 %v811_v48 }
  0x92   : > { %673 = vmatpush.msrb.mxu2 %v241_v6  ;;  %746 = vmatpush.msrb.mxu0 %v271_v7 }
  0x93   : > { %674 = vmatmul.f32.vlgmr.msrb.gmra.mxu2 %v1373_v21  ;;  %822 = vmatpush.msra.mxu3 %v793_v32 }
  0x94   : > { %765 = vmatpush.msra.mxu2 %v339_v8  ;;  %747 = vmatpush.msrb.mxu0 %v267_v9  ;;  %v800_v8 = vld [vmem:[#allocation9 + $0x80] sm:$0xff] }
  0x95   : > { %823 = vmatpush.msra.mxu3 %v792_v33  ;;  %841 = vmatpush.msrb.mxu1 %v810_v49 }
  0x96   : > { %766 = vmatpush.msra.mxu2 %v335_v10  ;;  %748 = vmatpush.msrb.mxu0 %v263_v11 }
  0x97   : > { %842 = vmatpush.msrb.mxu1 %v809_v51 }
  0x98   : > { %767 = vmatpush.msra.mxu2 %v331_v12  ;;  %749 = vmatpush.msrb.mxu0 %v259_v13 }
  0x99   : > { %843 = vmatpush.msrb.mxu1 %v808_v52 }
  0x9a   : > { %768 = vmatpush.msra.mxu2 %v327_v15  ;;  %750 = vmatpush.msrb.mxu0 %v255_v16 }
  0x9b   : > { %844 = vmatpush.msrb.mxu1 %v807_v56 }
  0x9c   : > { %769 = vmatpush.msra.mxu2 %v323_v17  ;;  %751 = vmatpush.msrb.mxu0 %v251_v18 }
  0x9d   : > { %845 = vmatpush.msrb.mxu1 %v806_v57 }
  0x9e   : > { %770 = vmatpush.msra.mxu2 %v319_v19  ;;  %752 = vmatpush.msrb.mxu0 %v247_v20 }
  0x9f   : > { %846 = vmatpush.msrb.mxu1 %v805_v59 }
  0xa0   : > { %771 = vmatpush.msra.mxu2 %v315_v22  ;;  %753 = vmatpush.msrb.mxu0 %v243_v23 }
  0xa1   : > { %754 = vmatmul.f32.vlgmr.msrb.gmra.mxu0 %v1373_v21  ;;  %v791_v21 = vld [vmem:[#allocation9 + $0x38] sm:$0xff]  ;;  %847 = vmatpush.msrb.mxu1 %v804_v61 }
  0xa2   : > { %772 = vmatpush.msra.mxu2 %v311_v24  ;;  %824 = vmatpush.msra.mxu3 %v791_v21 }
  0xa3   : > { %848 = vmatpush.msrb.mxu1 %v803_v0 }
  0xa4   : > { %773 = vmatpush.msra.mxu2 %v307_v25  ;;  %825 = vmatpush.msra.mxu3 %v790_v34 }
  0xa5   : > { %983 = vmatmul.msk.f32.vlgmr.msra.gmra.mxu2 %vm452_vm1, %v1376_v38  ;;  %v786_v38 = vld [vmem:[#allocation9 + $0x10] sm:$0xff]  ;;  %849 = vmatpush.msrb.mxu1 %v802_v3 }
  0xa6   : > { %826 = vmatpush.msra.mxu3 %v789_v35 }
  0xa7   : > { %850 = vmatpush.msrb.mxu1 %v801_v5 }
  0xa8   : > { %827 = vmatpush.msra.mxu3 %v788_v36 }
  0xa9   : > { %851 = vmatpush.msrb.mxu1 %v800_v8 }
  0xaa   : > { %828 = vmatpush.msra.mxu3 %v787_v37 }
  0xac   : > { %829 = vmatpush.msra.mxu3 %v786_v38 }
  0xae   : > { %830 = vmatpush.msra.mxu3 %v785_v39 }
  0xb0   : > { %831 = vmatpush.msra.mxu3 %v784_v41 }
  0xcf   : > { %v532_v40 = vpop.f32.mrf.mxu3 }
  0xdd   : > { %v552_v44 = vpop.f32.mrf.mxu1 }
  0xe0   : > { %v492_v55 = vpop.f32.mrf.mxu2 }
  0xe1   : > { %v472_v53 = vpop.f32.mrf.mxu0 }
  0xe2   : > { %v493_v60 = vadd.f32 %v492_v55, %v472_v53 }
  0xeb   : > { %v572_v47 = vpop.f32.mrf.mxu3 }
  0xec   : > { %v573_v62 = vadd.f32 %v572_v47, %v552_v44 }
  0xed   : > { %v512_v10 = vpop.f32.mrf.mxu2 }
  0xee   : > { %v533_v16 = vadd.f32 %v532_v40, %v512_v10 }
  0xf4   : > { %v635_v58 = vpop.f32.mrf.mxu3 }
  0xf5   : > { %v636_v54 = vadd.f32 %v635_v58, %v493_v60 }
  0xf6   : > { %v655_v50 = vpop.f32.mrf.mxu1 }
  0xf7   : > { %v656_v14 = vadd.f32 %v655_v50, %v636_v54 }
  0xf9   : > { %v778_v6 = vmul.f32 %v656_v14, %v656_v14 }
  0xfd   : > { %v592_v11 = vpop.f32.mrf.mxu0 }
 0x102   : > { %v715_v63 = vpop.f32.mrf.mxu1 }
 0x103   : > { %v716_v1 = vadd.f32 %v715_v63, %v573_v62 }
 0x105   : > { %v612_v12 = vpop.f32.mrf.mxu2 }
 0x106   : > { %v695_v13 = vpop.f32.mrf.mxu0  ;;  %v613_v19 = vadd.f32 %v612_v12, %v592_v11 }
 0x108   : > { %v735_v2 = vpop.f32.mrf.mxu3 }
 0x109   : > { %v736_v4 = vadd.f32 %v735_v2, %v716_v1 }
 0x10b   : > { %v780_v7 = vmul.f32 %v736_v4, %v736_v4 }
 0x10d   : > { %v782_v9 = vadd.f32 %v780_v7, %v778_v6 }
 0x10f   : > { %832 = vmatmul.f32.vlgmr.msra.gmra.mxu3 %v782_v9 }
 0x116   : > { %v675_v15 = vpop.f32.mrf.mxu2 }
 0x117   : > { %v676_v17 = vadd.f32 %v675_v15, %v533_v16 }
 0x119   : > { %v696_v20 = vadd.f32 %v695_v13, %v676_v17 }
 0x11b   : > { %v779_v25 = vmul.f32 %v696_v20, %v696_v20 }
 0x11e   : > { %v755_v18 = vpop.f32.mrf.mxu0 }
 0x11f   : > { %v756_v22 = vadd.f32 %v755_v18, %v613_v19 }
 0x128   : > { %v775_v23 = vpop.f32.mrf.mxu2 }
 0x129   : > { %v776_v24 = vadd.f32 %v775_v23, %v756_v22 }
 0x12b   : > { %v781_v26 = vmul.f32 %v776_v24, %v776_v24 }
 0x12d   : > { %v783_v27 = vadd.f32 %v781_v26, %v779_v25 }
 0x12f   : > { %852 = vmatmul.f32.vlgmr.msrb.gmra.mxu1 %v783_v27 }
 0x192   : > { %v833_v28 = vpop.f32.mrf.mxu3 }
 0x1ac   : > { %v853_v29 = vpop.f32.mrf.mxu1 }
 0x1ad   : > { %v854_v30 = vadd.f32 %v853_v29, %v833_v28 }
 0x1af   : > { %856 = vst [vmem:[%s199_s13] sm:$0xff] %v854_v30 }
 0x1b0   : > { %1181 = shalt.err (!%p1178_p7)
}
 0x1b1   : > { %1002 = dma.vmem_to_hbm [thread:$0]  (%p1298_p5), %s871_s23, 128, %s873_s28, %s858_s29  }
 0x1b2 PF: > { %p1024_p8 = scmp.ge.s32.totalorder %s1226_s18, 2  ;;  %s884_s30 = sand.u32 1, %s1214_s15  }
 0x1b3   : > { %s885_s27 = scalar_lea.sflag [#allocation6], %s884_s30 }
 0x1b4   : > { %p1015_p9 = pnand %p1024_p8, %p1302_p6 }
 0x1b6   : > { %p1016_p10 = pneg %p1015_p9 }
 0x1b8   : > { %1209 = dma.done.wait (%p1016_p10), %s885_s27, 128  }
 0x1b9   : > { %1211 = vsyncadd (%p1016_p10), %s885_s27, 4294967168  ;;  %p16_p11 = scmp.ge.s32.totalorder %s1285_s21, 4   ;;  %s1439_s15 = smov %s1218_s16 }
 0x1ba   : > { %s1440_s16 = smov %s1222_s17  ;;  %s1441_s17 = smov %s1296_s24 }
 0x1bb   : > { %s1442_s18 = smov %s1285_s21  ;;  %18 = sbr.rel (!%p16_p11) target bundleno = 5 (0x5), region = 101 }
 0x1c0   :  { %891 = vsyncpa [#allocation5], 1 }
 0x1c1   :  { %893 = vsyncpa [#allocation5 + $0x1], 1 }
 0x1c2   :  { %894 = vsyncpa [#allocation8], 1 }
 0x1c3   :  { %895 = vsyncpa [#allocation6], 1 }
 0x1c4   :  { %897 = vsyncpa [#allocation6 + $0x1], 1 }
 0x1c5   :  { %898 = vsyncmov [#allocation3] }
 0x1c8   :  { %s899_s18 = vpop.sfrf %898 }
 0x1c9   :  { %p988_p5 = scmp.ne.s32.totalorder %s899_s18, 0 }
 0x1cb   :  { %903 = shalt.err (%p988_p5)  }

</bundles_post_ra>
